<compile_context>
chip_gen: v6e
topology: v6e:2x2x1
jax: 0.10.0
libtpu: 0.0.40
codegen_flags: <defaults>
</compile_context>

<pallas_src>
import functools

import numpy as np
import jax
import jax.numpy as jnp
from jax.experimental import pallas as pl
from jax.experimental.pallas import tpu as pltpu


def _marg_kernel(xT_ref, w_ref, c_ref, s_ref, b_ref, out_ref, *, logc):
    xT = xT_ref[...]                                                # [d, tn]
    # y^T = W @ x^T - c,  W = (I + tril(tri,-1)) @ diag(var) stacked over K
    yT = jnp.dot(w_ref[...], xT,
                 preferred_element_type=jnp.float32) - c_ref[...]   # [K*d, tn]
    # per-component squared norm via segment-sum matmul (MXU, lane-dense)
    ssT = jnp.dot(s_ref[...], yT * yT,
                  preferred_element_type=jnp.float32)                # [K, tn]
    z = -0.5 * ssT + b_ref[...]                                      # [K, tn]; b = logdet + logw
    # logsumexp over the K components (sublane axis), -inf-safe like torch ref
    m = jnp.max(z, axis=0, keepdims=True)                            # [1, tn]
    msafe = jnp.where(jnp.isfinite(m), m, 0.0)
    lse = jnp.log(jnp.sum(jnp.exp(z - msafe), axis=0, keepdims=True)) + msafe
    lse = jnp.where(lse == -jnp.inf, -100000.0, lse)
    out_ref[...] = (logc + lse).astype(out_ref.dtype)                # [1, tn] lane-dense store


def marg_forward(x, means, logvar, tri, weigh, *, use_tanh=True, tn=512):
    n, d = x.shape
    K = means.shape[0]
    f32 = jnp.float32
    x = x.astype(f32)
    means = means.reshape(K, d).astype(f32)
    logvar = logvar.reshape(K, d).astype(f32)
    tri = tri.reshape(K, d, d).astype(f32)
    weigh = weigh.reshape(1, K).astype(f32)

    # ---- grid-invariant parameter math (hoisted out of the kernel) ----
    logw = jax.nn.log_softmax(weigh, axis=1).reshape(K, 1)                  # [K, 1]
    lv = jnp.tanh(logvar) if use_tanh else logvar
    var = jnp.exp(lv)                                                       # [K, d]
    logdet = jnp.sum(jnp.log(jnp.abs(var) + 1e-8), axis=-1, keepdims=True)  # [K, 1]
    bias = logdet + logw                                                    # [K, 1]
    L = jnp.tril(tri, k=-1)                                                 # [K, d, d]
    Wk = (jnp.eye(d, dtype=f32)[None] + L) * var[:, None, :]                # (I+L_k) diag(var_k)
    W = Wk.reshape(K * d, d)                                                # [K*d, d]
    c = jnp.einsum('kij,kj->ki', Wk, means).reshape(K * d, 1)               # [K*d, 1]
    S = jnp.kron(jnp.eye(K, dtype=f32), jnp.ones((1, d), f32))              # [K, K*d]

    # ---- lane tile: multiple of 128, capped by padded N (keeps grid tight) ----
    tn = max(128, int(tn))
    tn = ((tn + 127) // 128) * 128
    tn = min(tn, ((n + 127) // 128) * 128)
    n_pad = pl.cdiv(n, tn) * tn
    xT = jnp.transpose(x)                                                   # [d, n]
    if n_pad != n:
        xT = jnp.pad(xT, ((0, 0), (0, n_pad - n)))   # zero-padded cols are sliced away below

    Kd = K * d
    logc = float(-d / 2.0 * np.log(2.0 * np.pi))
    kern = functools.partial(_marg_kernel, logc=logc)

    logpdf = pl.pallas_call(
        kern,
        out_shape=jax.ShapeDtypeStruct((1, n_pad), f32),
        grid_spec=pltpu.PrefetchScalarGridSpec(
            num_scalar_prefetch=0,
            grid=(n_pad // tn,),
            in_specs=[
                pl.BlockSpec((d, tn), lambda i: (0, i)),    # streamed x^T tile
                pl.BlockSpec((Kd, d), lambda i: (0, 0)),    # W   (grid-invariant)
                pl.BlockSpec((Kd, 1), lambda i: (0, 0)),    # c   (grid-invariant)
                pl.BlockSpec((K, Kd), lambda i: (0, 0)),    # segment-sum matrix
                pl.BlockSpec((K, 1), lambda i: (0, 0)),     # logdet + logw
            ],
            out_specs=pl.BlockSpec((1, tn), lambda i: (0, i)),
        ),
        compiler_params=pltpu.CompilerParams(
            dimension_semantics=("parallel",)),
    )(xT, W, c, S, bias)

    # forward(x) = mean(-logpdf(x)); padded columns dropped before the mean.
    return jnp.mean(-logpdf[0, :n])


def _reference(x, means, logvar, tri, weigh, *, use_tanh=True):
    # pure-JAX transcription of MargKernel.logpdf / forward for validation
    n, d = x.shape
    K = means.shape[0]
    logvar = logvar.reshape(K, d)
    tri = tri.reshape(K, d, d)
    weigh = weigh.reshape(1, K)
    w = jax.nn.log_softmax(weigh, axis=1)
    y = x[:, None, :] - means[None]
    lv = jnp.tanh(logvar) if use_tanh else logvar
    var = jnp.exp(lv)
    y = y * var[None]
    L = jnp.tril(tri, k=-1)
    y = y + jnp.einsum('kde,nke->nkd', L, y)
    s = jnp.sum(y ** 2, axis=2)
    z = -s / 2.0 + jnp.sum(jnp.log(jnp.abs(var) + 1e-8), axis=-1)[None] + w
    lse = jax.nn.logsumexp(z, axis=-1)
    lse = jnp.where(lse == -jnp.inf, -100000.0, lse)
    logC = -d / 2.0 * np.log(2.0 * np.pi)
    return jnp.mean(-(logC + lse))


if __name__ == "__main__":
    # small shapes consistent with the module: N=batch, d=zc_dim, K=marg_modes
    N, d, K = 8, 32, 16
    init_std = 0.1
    use_tanh = True

    key = jax.random.PRNGKey(0)
    k1, k2, k3, k4 = jax.random.split(key, 4)
    x = jax.random.normal(k1, (N, d), dtype=jnp.float32)
    means = init_std * jax.random.normal(k2, (K, d), dtype=jnp.float32)          # optimize_mu=True
    logvar = init_std * jax.random.normal(k3, (1, K, d), dtype=jnp.float32)      # cov_diagonal='var'
    tri = init_std * jax.random.normal(k4, (1, K, d, d), dtype=jnp.float32)      # cov_off_diagonal='var'
    weigh = jnp.ones((1, K), dtype=jnp.float32)                                  # average='var'

    out = marg_forward(x, means, logvar, tri, weigh, use_tanh=use_tanh)
    out = jax.block_until_ready(out)

    ref = _reference(x, means, logvar, tri, weigh, use_tanh=use_tanh)
    assert jnp.allclose(out, ref, rtol=1e-4, atol=1e-4), (out, ref)
    print("KERNEL_OK")
</pallas_src>

<mosaic_0001>
module attributes {stable_mosaic.version = 11 : i64} {
  func.func @_marg_kernel(%arg0: i32, %arg1: memref<32x128xf32, #tpu.memory_space<vmem>>, %arg2: memref<512x32xf32, #tpu.memory_space<vmem>>, %arg3: memref<512x1xf32, #tpu.memory_space<vmem>>, %arg4: memref<16x512xf32, #tpu.memory_space<vmem>>, %arg5: memref<16x1xf32, #tpu.memory_space<vmem>>, %arg6: memref<1x128xf32, #tpu.memory_space<vmem>>) attributes {dimension_semantics = [#tpu.dimension_semantics<parallel>], iteration_bounds = array<i64: 1>, scalar_prefetch = 0 : i64, scratch_operands = 0 : i64, tpu.core_type = #tpu.core_type<tc>, window_params = [{transform_indices = @transform_0, window_bounds = array<i64: 32, 128>}, {pipeline_mode = #tpu.pipeline_mode<synchronous>, transform_indices = @transform_1, window_bounds = array<i64: 512, 32>}, {pipeline_mode = #tpu.pipeline_mode<synchronous>, transform_indices = @transform_2, window_bounds = array<i64: 512, 1>}, {pipeline_mode = #tpu.pipeline_mode<synchronous>, transform_indices = @transform_3, window_bounds = array<i64: 16, 512>}, {pipeline_mode = #tpu.pipeline_mode<synchronous>, transform_indices = @transform_4, window_bounds = array<i64: 16, 1>}, {transform_indices = @transform_5, window_bounds = array<i64: 1, 128>}]} {
    %c0 = arith.constant 0 : index
    %c0_0 = arith.constant 0 : index
    %0 = vector.load %arg1[%c0, %c0_0] : memref<32x128xf32, #tpu.memory_space<vmem>>, vector<32x128xf32>
    %c0_1 = arith.constant 0 : index
    %c0_2 = arith.constant 0 : index
    %1 = vector.load %arg2[%c0_1, %c0_2] : memref<512x32xf32, #tpu.memory_space<vmem>>, vector<512x32xf32>
    %cst = arith.constant dense<0.000000e+00> : vector<512x128xf32>
    %2 = tpu.matmul %1, %0, %cst {dimension_numbers = #tpu.dot_dimension_numbers<[1], [0], [0], [1], [0, 0, 1, 1], [], []>} : vector<512x32xf32>, vector<32x128xf32>, vector<512x128xf32> -> vector<512x128xf32>
    %c0_3 = arith.constant 0 : index
    %c0_4 = arith.constant 0 : index
    %3 = vector.load %arg3[%c0_3, %c0_4] : memref<512x1xf32, #tpu.memory_space<vmem>>, vector<512x1xf32>
    %4 = vector.broadcast %3 : vector<512x1xf32> to vector<512x128xf32>
    %5 = arith.subf %2, %4 : vector<512x128xf32>
    %c0_5 = arith.constant 0 : index
    %c0_6 = arith.constant 0 : index
    %6 = vector.load %arg4[%c0_5, %c0_6] : memref<16x512xf32, #tpu.memory_space<vmem>>, vector<16x512xf32>
    %7 = arith.mulf %5, %5 : vector<512x128xf32>
    %cst_7 = arith.constant dense<0.000000e+00> : vector<16x128xf32>
    %8 = tpu.matmul %6, %7, %cst_7 {dimension_numbers = #tpu.dot_dimension_numbers<[1], [0], [0], [1], [0, 0, 1, 1], [], []>} : vector<16x512xf32>, vector<512x128xf32>, vector<16x128xf32> -> vector<16x128xf32>
    %cst_8 = arith.constant -5.000000e-01 : f32
    %9 = vector.broadcast %cst_8 : f32 to vector<16x128xf32>
    %10 = arith.mulf %9, %8 : vector<16x128xf32>
    %c0_9 = arith.constant 0 : index
    %c0_10 = arith.constant 0 : index
    %11 = vector.load %arg5[%c0_9, %c0_10] : memref<16x1xf32, #tpu.memory_space<vmem>>, vector<16x1xf32>
    %12 = vector.broadcast %11 : vector<16x1xf32> to vector<16x128xf32>
    %13 = arith.addf %10, %12 : vector<16x128xf32>
    %cst_11 = arith.constant dense<0xFF800000> : vector<128xf32>
    %14 = vector.multi_reduction <maximumf>, %13, %cst_11 [0] : vector<16x128xf32> to vector<128xf32>
    %15 = vector.shape_cast %14 : vector<128xf32> to vector<1x128xf32>
    %16 = tpu.weird %15 : vector<1x128xf32> -> vector<1x128xi1>
    %cst_12 = arith.constant dense<true> : vector<1x128xi1>
    %17 = arith.xori %16, %cst_12 : vector<1x128xi1>
    %cst_13 = arith.constant 0.000000e+00 : f32
    %18 = vector.broadcast %cst_13 : f32 to vector<1x128xf32>
    %19 = arith.select %17, %15, %18 : vector<1x128xi1>, vector<1x128xf32>
    %20 = vector.broadcast %19 : vector<1x128xf32> to vector<16x128xf32>
    %21 = arith.subf %13, %20 : vector<16x128xf32>
    %22 = math.exp %21 : vector<16x128xf32>
    %cst_14 = arith.constant dense<0.000000e+00> : vector<128xf32>
    %23 = vector.multi_reduction <add>, %22, %cst_14 [0] : vector<16x128xf32> to vector<128xf32>
    %24 = vector.shape_cast %23 : vector<128xf32> to vector<1x128xf32>
    %25 = math.log %24 : vector<1x128xf32>
    %26 = arith.addf %25, %19 : vector<1x128xf32>
    %cst_15 = arith.constant 0xFF800000 : f32
    %27 = vector.broadcast %cst_15 : f32 to vector<1x128xf32>
    %28 = arith.cmpf oeq, %26, %27 : vector<1x128xf32>
    %cst_16 = arith.constant -1.000000e+05 : f32
    %29 = vector.broadcast %cst_16 : f32 to vector<1x128xf32>
    %30 = arith.select %28, %29, %26 : vector<1x128xi1>, vector<1x128xf32>
    %cst_17 = arith.constant -29.4060326 : f32
    %31 = vector.broadcast %cst_17 : f32 to vector<1x128xf32>
    %32 = arith.addf %31, %30 : vector<1x128xf32>
    %c0_18 = arith.constant 0 : index
    %c0_19 = arith.constant 0 : index
    %33 = vector.load %arg6[%c0_18, %c0_19] : memref<1x128xf32, #tpu.memory_space<vmem>>, vector<1x128xf32>
    tpu.vector_store %arg6[%c0_18, %c0_19], %32 {strides = array<i32>} : memref<1x128xf32, #tpu.memory_space<vmem>>, vector<1x128xf32>,
    return
  }
  func.func @transform_0(%arg0: i32) -> (i32, i32) {
    %c0_i32 = arith.constant 0 : i32
    %c0_i32_0 = arith.constant 0 : i32
    return %c0_i32, %arg0 : i32, i32
  }
  func.func @transform_1(%arg0: i32) -> (i32, i32) {
    %c0_i32 = arith.constant 0 : i32
    %c0_i32_0 = arith.constant 0 : i32
    %c0_i32_1 = arith.constant 0 : i32
    return %c0_i32, %c0_i32_0 : i32, i32
  }
  func.func @transform_2(%arg0: i32) -> (i32, i32) {
    %c0_i32 = arith.constant 0 : i32
    %c0_i32_0 = arith.constant 0 : i32
    %c0_i32_1 = arith.constant 0 : i32
    return %c0_i32, %c0_i32_0 : i32, i32
  }
  func.func @transform_3(%arg0: i32) -> (i32, i32) {
    %c0_i32 = arith.constant 0 : i32
    %c0_i32_0 = arith.constant 0 : i32
    %c0_i32_1 = arith.constant 0 : i32
    return %c0_i32, %c0_i32_0 : i32, i32
  }
  func.func @transform_4(%arg0: i32) -> (i32, i32) {
    %c0_i32 = arith.constant 0 : i32
    %c0_i32_0 = arith.constant 0 : i32
    %c0_i32_1 = arith.constant 0 : i32
    return %c0_i32, %c0_i32_0 : i32, i32
  }
  func.func @transform_5(%arg0: i32) -> (i32, i32) {
    %c0_i32 = arith.constant 0 : i32
    %c0_i32_0 = arith.constant 0 : i32
    return %c0_i32, %arg0 : i32, i32
  }
}

</mosaic_0001>

<bundles_post_ra>
// kernel: tpu_custom_call.1
= control target key start
LH: loop header
LB: loop body
LE: loop exit
PB: predicated region body
PF: predicated region fallthrough
CT: control target
= control target key end

     0   :  { %v1750_v3 = vmov 0   ;;  %vm89_vm0 = vcmask 261120   ;;  %s2582_s0 = inlined_call_operand.vmem [shape: f32[32,128], index: 0, kind: input, shape index: {}]   ;;  %s2583_s1 = inlined_call_operand.vmem [shape: f32[512,32], index: 1, kind: input, shape index: {}]   ;;  %s2584_s2 = inlined_call_operand.vmem [shape: f32[512,1], index: 2, kind: input, shape index: {}]   ;;  %s2585_s3 = inlined_call_operand.vmem [shape: f32[16,512], index: 3, kind: input, shape index: {}]   ;;  %s2586_s4 = inlined_call_operand.vmem [shape: f32[16,1], index: 4, kind: input, shape index: {}]   ;;  %s2587_s5 = inlined_call_operand.hbm [shape: f32[1,128], index: 5, kind: output, shape index: {}]  }
   0x1   :  { %v24_v0 = vld [vmem:[%s2582_s0 + $0x18] sm:$0xff]  ;;  %v697_v2 = vld [vmem:[%s2584_s2 + $0xf0] sm:$0xff]  ;;  %1721 = vset.pattern.permute.xlu1 %v1750_v3  ;;  %1720 = vset.pattern.permute.xlu0 %v1750_v3  ;;  %v22_v5 = vld [vmem:[%s2582_s0 + $0x8] sm:$0xff] }
   0x2   :  { %v698_v1 = vld [vmem:[%s2584_s2 + $0xf8] sm:$0xff]  ;;  %1605 = vmatprep.subr.mxu0 %v24_v0  ;;  %1709 = vmatprep.subr.mxu1 %v24_v0  ;;  %v23_v4 = vld [vmem:[%s2582_s0 + $0x10] sm:$0xff]  ;;  %v21_v8 = vld [vmem:[%s2582_s0] sm:$0xff] }
   0x3   :  { %888 = vperm.xlu0 %1720, %v698_v1   ;;  %883 = vperm.xlu1 %1721, %v697_v2   ;;  %v682_v6 = vld [vmem:[%s2584_s2 + $0x78] sm:$0xff]  ;;  %v681_v7 = vld [vmem:[%s2584_s2 + $0x70] sm:$0xff]  ;;  %v25_v9 = vld [vmem:[%s2583_s1] sm:$0xff] }
   0x4   :  { %1606 = vmatpush3.msra.mxu0 %v24_v0  ;;  %1713 = vmatpush3.msra.mxu1 %v24_v0  ;;  %v67_v10 = vld [vmem:[%s2583_s1 + $0x150] sm:$0xff]  ;;  %v26_v11 = vld [vmem:[%s2583_s1 + $0x8] sm:$0xff]  ;;  %v68_v12 = vld [vmem:[%s2583_s1 + $0x158] sm:$0xff] }
   0x5   :  { %1607 = vmatprep.subr.mxu0 %v23_v4  ;;  %1710 = vmatprep.subr.mxu1 %v23_v4  ;;  %v696_v13 = vld [vmem:[%s2584_s2 + $0xe8] sm:$0xff]  ;;  %v27_v15 = vld [vmem:[%s2583_s1 + $0x10] sm:$0xff]  ;;  %v69_v16 = vld [vmem:[%s2583_s1 + $0x160] sm:$0xff] }
   0x6   :  { %1608 = vmatpush3.msra.mxu0 %v23_v4  ;;  %1714 = vmatpush3.msra.mxu1 %v23_v4  ;;  %v680_v14 = vld [vmem:[%s2584_s2 + $0x68] sm:$0xff]  ;;  %v28_v17 = vld [vmem:[%s2583_s1 + $0x18] sm:$0xff]  ;;  %v695_v19 = vld [vmem:[%s2584_s2 + $0xe0] sm:$0xff] }
   0x7   :  { %1609 = vmatprep.subr.mxu0 %v22_v5  ;;  %1711 = vmatprep.subr.mxu1 %v22_v5  ;;  %v70_v18 = vld [vmem:[%s2583_s1 + $0x168] sm:$0xff]  ;;  %v679_v20 = vld [vmem:[%s2584_s2 + $0x60] sm:$0xff]  ;;  %v71_v22 = vld [vmem:[%s2583_s1 + $0x170] sm:$0xff] }
   0x8   :  { %808 = vperm.xlu0 %1720, %v682_v6   ;;  %803 = vperm.xlu1 %1721, %v681_v7   ;;  %v29_v21 = vld [vmem:[%s2583_s1 + $0x20] sm:$0xff]  ;;  %v30_v23 = vld [vmem:[%s2583_s1 + $0x28] sm:$0xff]  ;;  %v72_v24 = vld [vmem:[%s2583_s1 + $0x178] sm:$0xff] }
   0x9   :  { %1610 = vmatpush3.msra.mxu0 %v22_v5  ;;  %1715 = vmatpush3.msra.mxu1 %v22_v5  ;;  %v694_v25 = vld [vmem:[%s2584_s2 + $0xd8] sm:$0xff]  ;;  %v31_v27 = vld [vmem:[%s2583_s1 + $0x30] sm:$0xff]  ;;  %v73_v28 = vld [vmem:[%s2583_s1 + $0x180] sm:$0xff] }
   0xa   :  { %1611 = vmatprep.subr.mxu0 %v21_v8  ;;  %1712 = vmatprep.subr.mxu1 %v21_v8  ;;  %v678_v26 = vld [vmem:[%s2584_s2 + $0x58] sm:$0xff]  ;;  %v74_v30 = vld [vmem:[%s2583_s1 + $0x188] sm:$0xff]  ;;  %v693_v31 = vld [vmem:[%s2584_s2 + $0xd0] sm:$0xff] }
   0xb   :  { %1612 = vmatpush3.msra.mxu0 %v21_v8  ;;  %1716 = vmatpush3.msra.mxu1 %v21_v8  ;;  %v32_v29 = vld [vmem:[%s2583_s1 + $0x38] sm:$0xff]  ;;  %v677_v32 = vld [vmem:[%s2584_s2 + $0x50] sm:$0xff]  ;;  %v33_v33 = vld [vmem:[%s2583_s1 + $0x40] sm:$0xff] }
   0xc   :  { %1613 = vmatprep.mubr.msk.f32.mxu0 %vm89_vm0, %v25_v9  ;;  %1676 = vmatprep.mubr.msk.f32.mxu1 %vm89_vm0, %v67_v10  ;;  %v75_v34 = vld [vmem:[%s2583_s1 + $0x190] sm:$0xff]  ;;  %v34_v35 = vld [vmem:[%s2583_s1 + $0x48] sm:$0xff]  ;;  %v76_v36 = vld [vmem:[%s2583_s1 + $0x198] sm:$0xff] }
   0xd   :  { %1614 = vmatmul.mubr.msk.f32.vlgmr.msra.gmra.mxu0 %vm89_vm0, %v26_v11  ;;  %1677 = vmatmul.mubr.msk.f32.vlgmr.msra.gmra.mxu1 %vm89_vm0, %v68_v12  ;;  %v692_v37 = vld [vmem:[%s2584_s2 + $0xc8] sm:$0xff]  ;;  %v35_v39 = vld [vmem:[%s2583_s1 + $0x50] sm:$0xff]  ;;  %v77_v40 = vld [vmem:[%s2583_s1 + $0x1a0] sm:$0xff] }
   0xe   :  { %878 = vperm.xlu0 %1720, %v696_v13   ;;  %798 = vperm.xlu1 %1721, %v680_v14   ;;  %v676_v38 = vld [vmem:[%s2584_s2 + $0x48] sm:$0xff]  ;;  %v36_v41 = vld [vmem:[%s2583_s1 + $0x58] sm:$0xff]  ;;  %v691_v43 = vld [vmem:[%s2584_s2 + $0xc0] sm:$0xff] }
   0xf   :  { %1616 = vmatprep.mubr.msk.f32.mxu0 %vm89_vm0, %v27_v15  ;;  %1679 = vmatprep.mubr.msk.f32.mxu1 %vm89_vm0, %v69_v16  ;;  %v78_v42 = vld [vmem:[%s2583_s1 + $0x1a8] sm:$0xff]  ;;  %v675_v44 = vld [vmem:[%s2584_s2 + $0x40] sm:$0xff]  ;;  %v79_v46 = vld [vmem:[%s2583_s1 + $0x1b0] sm:$0xff] }
  0x10   :  { %v37_v45 = vld [vmem:[%s2583_s1 + $0x60] sm:$0xff]  ;;  %v38_v47 = vld [vmem:[%s2583_s1 + $0x68] sm:$0xff]  ;;  %v80_v48 = vld [vmem:[%s2583_s1 + $0x1b8] sm:$0xff] }
  0x11   :  { %1617 = vmatmul.mubr.msk.f32.gmra.mxu0 %vm89_vm0, %v28_v17  ;;  %1680 = vmatmul.mubr.msk.f32.gmra.mxu1 %vm89_vm0, %v70_v18  ;;  %v690_v49 = vld [vmem:[%s2584_s2 + $0xb8] sm:$0xff]  ;;  %v39_v51 = vld [vmem:[%s2583_s1 + $0x70] sm:$0xff]  ;;  %v81_v52 = vld [vmem:[%s2583_s1 + $0x1c0] sm:$0xff] }
  0x12   :  { %873 = vperm.xlu0 %1720, %v695_v19   ;;  %793 = vperm.xlu1 %1721, %v679_v20   ;;  %v674_v50 = vld [vmem:[%s2584_s2 + $0x38] sm:$0xff]  ;;  %v82_v54 = vld [vmem:[%s2583_s1 + $0x1c8] sm:$0xff]  ;;  %v689_v55 = vld [vmem:[%s2584_s2 + $0xb0] sm:$0xff] }
  0x13   :  { %1619 = vmatprep.mubr.msk.f32.mxu0 %vm89_vm0, %v29_v21  ;;  %1682 = vmatprep.mubr.msk.f32.mxu1 %vm89_vm0, %v71_v22  ;;  %v40_v53 = vld [vmem:[%s2583_s1 + $0x78] sm:$0xff]  ;;  %v673_v56 = vld [vmem:[%s2584_s2 + $0x30] sm:$0xff]  ;;  %v41_v57 = vld [vmem:[%s2583_s1 + $0x80] sm:$0xff] }
  0x14   :  { %v83_v58 = vld [vmem:[%s2583_s1 + $0x1d0] sm:$0xff]  ;;  %v42_v59 = vld [vmem:[%s2583_s1 + $0x88] sm:$0xff]  ;;  %v84_v60 = vld [vmem:[%s2583_s1 + $0x1d8] sm:$0xff] }
  0x15   :  { %1620 = vmatmul.mubr.msk.f32.gmra.mxu0 %vm89_vm0, %v30_v23  ;;  %1683 = vmatmul.mubr.msk.f32.gmra.mxu1 %vm89_vm0, %v72_v24  ;;  %v688_v61 = vld [vmem:[%s2584_s2 + $0xa8] sm:$0xff]  ;;  %v43_v63 = vld [vmem:[%s2583_s1 + $0x90] sm:$0xff]  ;;  %v85_v0 = vld [vmem:[%s2583_s1 + $0x1e0] sm:$0xff] }
  0x16   :  { %868 = vperm.xlu0 %1720, %v694_v25   ;;  %788 = vperm.xlu1 %1721, %v678_v26   ;;  %v672_v62 = vld [vmem:[%s2584_s2 + $0x28] sm:$0xff] }
  0x17   :  { %1622 = vmatprep.mubr.msk.f32.mxu0 %vm89_vm0, %v31_v27  ;;  %1685 = vmatprep.mubr.msk.f32.mxu1 %vm89_vm0, %v73_v28 }
  0x19   :  { %1623 = vmatmul.mubr.msk.f32.gmra.mxu0 %vm89_vm0, %v32_v29  ;;  %1686 = vmatmul.mubr.msk.f32.gmra.mxu1 %vm89_vm0, %v74_v30 }
  0x1a   :  { %863 = vperm.xlu0 %1720, %v693_v31   ;;  %783 = vperm.xlu1 %1721, %v677_v32  }
  0x1b   :  { %1625 = vmatprep.mubr.msk.f32.mxu0 %vm89_vm0, %v33_v33  ;;  %1688 = vmatprep.mubr.msk.f32.mxu1 %vm89_vm0, %v75_v34 }
  0x1d   :  { %1626 = vmatmul.mubr.msk.f32.gmra.mxu0 %vm89_vm0, %v34_v35  ;;  %1689 = vmatmul.mubr.msk.f32.gmra.mxu1 %vm89_vm0, %v76_v36 }
  0x1e   :  { %858 = vperm.xlu0 %1720, %v692_v37   ;;  %778 = vperm.xlu1 %1721, %v676_v38  }
  0x1f   :  { %1628 = vmatprep.mubr.msk.f32.mxu0 %vm89_vm0, %v35_v39  ;;  %1691 = vmatprep.mubr.msk.f32.mxu1 %vm89_vm0, %v77_v40 }
  0x21   :  { %1629 = vmatmul.mubr.msk.f32.gmra.mxu0 %vm89_vm0, %v36_v41  ;;  %1692 = vmatmul.mubr.msk.f32.gmra.mxu1 %vm89_vm0, %v78_v42 }
  0x22   :  { %853 = vperm.xlu0 %1720, %v691_v43   ;;  %773 = vperm.xlu1 %1721, %v675_v44  }
  0x23   :  { %1631 = vmatprep.mubr.msk.f32.mxu0 %vm89_vm0, %v37_v45  ;;  %1694 = vmatprep.mubr.msk.f32.mxu1 %vm89_vm0, %v79_v46 }
  0x25   :  { %1632 = vmatmul.mubr.msk.f32.gmra.mxu0 %vm89_vm0, %v38_v47  ;;  %1695 = vmatmul.mubr.msk.f32.gmra.mxu1 %vm89_vm0, %v80_v48 }
  0x26   :  { %848 = vperm.xlu0 %1720, %v690_v49   ;;  %768 = vperm.xlu1 %1721, %v674_v50  }
  0x27   :  { %1634 = vmatprep.mubr.msk.f32.mxu0 %vm89_vm0, %v39_v51  ;;  %1697 = vmatprep.mubr.msk.f32.mxu1 %vm89_vm0, %v81_v52 }
  0x29   :  { %1635 = vmatmul.mubr.msk.f32.gmra.mxu0 %vm89_vm0, %v40_v53  ;;  %1698 = vmatmul.mubr.msk.f32.gmra.mxu1 %vm89_vm0, %v82_v54 }
  0x2a   :  { %843 = vperm.xlu0 %1720, %v689_v55   ;;  %763 = vperm.xlu1 %1721, %v673_v56  }
  0x2b   :  { %1637 = vmatprep.mubr.msk.f32.mxu0 %vm89_vm0, %v41_v57  ;;  %1700 = vmatprep.mubr.msk.f32.mxu1 %vm89_vm0, %v83_v58 }
  0x2c   :  { %10 = vsyncpa [#allocation3], 0  ;;  %v44_v1 = vld [vmem:[%s2583_s1 + $0x98] sm:$0xff]  ;;  %v86_v2 = vld [vmem:[%s2583_s1 + $0x1e8] sm:$0xff]  ;;  %vm1751_vm2 = vmmov 1  }
  0x2d   :  { %1638 = vmatmul.mubr.msk.f32.gmra.mxu0 %vm89_vm0, %v42_v59  ;;  %1701 = vmatmul.mubr.msk.f32.gmra.mxu1 %vm89_vm0, %v84_v60  ;;  %v687_v3 = vld [vmem:[%s2584_s2 + $0xa0] sm:$0xff]  ;;  %v87_v6 = vld [vmem:[%s2583_s1 + $0x1f0] sm:$0xff]  ;;  %v46_v7 = vld [vmem:[%s2583_s1 + $0xa8] sm:$0xff] }
  0x2e   :  { %838 = vperm.xlu0 %1720, %v688_v61   ;;  %758 = vperm.xlu1 %1721, %v672_v62   ;;  %v671_v4 = vld [vmem:[%s2584_s2 + $0x20] sm:$0xff]  ;;  %v88_v8 = vld [vmem:[%s2583_s1 + $0x1f8] sm:$0xff]  ;;  %v47_v11 = vld [vmem:[%s2583_s1 + $0xb0] sm:$0xff] }
  0x2f   :  { %1640 = vmatprep.mubr.msk.f32.mxu0 %vm89_vm0, %v43_v63  ;;  %1703 = vmatprep.mubr.msk.f32.mxu1 %vm89_vm0, %v85_v0  ;;  %v45_v5 = vld [vmem:[%s2583_s1 + $0xa0] sm:$0xff]  ;;  %v686_v9 = vld [vmem:[%s2584_s2 + $0x98] sm:$0xff]  ;;  %v685_v13 = vld [vmem:[%s2584_s2 + $0x90] sm:$0xff] }
  0x30   :  { %v670_v10 = vld [vmem:[%s2584_s2 + $0x18] sm:$0xff]  ;;  %v669_v14 = vld [vmem:[%s2584_s2 + $0x10] sm:$0xff]  ;;  %v49_v15 = vld [vmem:[%s2583_s1 + $0xc0] sm:$0xff] }
  0x31   :  { %1641 = vmatmul.mubr.msk.f32.gmra.mxu0 %vm89_vm0, %v44_v1  ;;  %1704 = vmatmul.mubr.msk.f32.gmra.mxu1 %vm89_vm0, %v86_v2  ;;  %v48_v12 = vld [vmem:[%s2583_s1 + $0xb8] sm:$0xff]  ;;  %v50_v16 = vld [vmem:[%s2583_s1 + $0xc8] sm:$0xff]  ;;  %v51_v19 = vld [vmem:[%s2583_s1 + $0xd0] sm:$0xff] }
  0x32   :  { %833 = vperm.xlu0 %1720, %v687_v3   ;;  %753 = vperm.xlu1 %1721, %v671_v4   ;;  %v684_v17 = vld [vmem:[%s2584_s2 + $0x88] sm:$0xff]  ;;  %v52_v20 = vld [vmem:[%s2583_s1 + $0xd8] sm:$0xff]  ;;  %v683_v21 = vld [vmem:[%s2584_s2 + $0x80] sm:$0xff] }
  0x33   :  { %1643 = vmatprep.mubr.msk.f32.mxu0 %vm89_vm0, %v45_v5  ;;  %1706 = vmatprep.mubr.msk.f32.mxu1 %vm89_vm0, %v87_v6  ;;  %v668_v18 = vld [vmem:[%s2584_s2 + $0x8] sm:$0xff]  ;;  %v667_v22 = vld [vmem:[%s2584_s2] sm:$0xff]  ;;  %v730_v25 = vld [vmem:[%s2584_s2 + $0x1f8] sm:$0xff] }
  0x34   :  { %v53_v23 = vld [vmem:[%s2583_s1 + $0xe0] sm:$0xff]  ;;  %v54_v24 = vld [vmem:[%s2583_s1 + $0xe8] sm:$0xff]  ;;  %v714_v26 = vld [vmem:[%s2584_s2 + $0x178] sm:$0xff] }
  0x35   :  { %1644 = vmatmul.mubr.msk.f32.gmra.mxu0 %vm89_vm0, %v46_v7  ;;  %1707 = vmatmul.mubr.msk.f32.gmra.mxu1 %vm89_vm0, %v88_v8  ;;  %v55_v27 = vld [vmem:[%s2583_s1 + $0xf0] sm:$0xff]  ;;  %v56_v28 = vld [vmem:[%s2583_s1 + $0xf8] sm:$0xff]  ;;  %v57_v31 = vld [vmem:[%s2583_s1 + $0x100] sm:$0xff] }
  0x36   :  { %828 = vperm.xlu0 %1720, %v686_v9   ;;  %748 = vperm.xlu1 %1721, %v670_v10   ;;  %v729_v29 = vld [vmem:[%s2584_s2 + $0x1f0] sm:$0xff]  ;;  %v58_v32 = vld [vmem:[%s2583_s1 + $0x108] sm:$0xff]  ;;  %v60_v36 = vld [vmem:[%s2583_s1 + $0x118] sm:$0xff] }
  0x37   :  { %1646 = vmatprep.mubr.msk.f32.mxu0 %vm89_vm0, %v47_v11  ;;  %v713_v30 = vld [vmem:[%s2584_s2 + $0x170] sm:$0xff]  ;;  %v728_v33 = vld [vmem:[%s2584_s2 + $0x1e8] sm:$0xff]  ;;  %v727_v37 = vld [vmem:[%s2584_s2 + $0x1e0] sm:$0xff] }
  0x38   :  { %v712_v34 = vld [vmem:[%s2584_s2 + $0x168] sm:$0xff]  ;;  %v59_v35 = vld [vmem:[%s2583_s1 + $0x110] sm:$0xff]  ;;  %v711_v38 = vld [vmem:[%s2584_s2 + $0x160] sm:$0xff] }
  0x39   :  { %1647 = vmatmul.mubr.msk.f32.gmra.mxu0 %vm89_vm0, %v48_v12  ;;  %v61_v39 = vld [vmem:[%s2583_s1 + $0x120] sm:$0xff]  ;;  %v62_v40 = vld [vmem:[%s2583_s1 + $0x128] sm:$0xff]  ;;  %v726_v41 = vld [vmem:[%s2584_s2 + $0x1d8] sm:$0xff] }
  0x3a   :  { %823 = vperm.xlu0 %1720, %v685_v13   ;;  %743 = vperm.xlu1 %1721, %v669_v14   ;;  %v710_v42 = vld [vmem:[%s2584_s2 + $0x158] sm:$0xff]  ;;  %v63_v43 = vld [vmem:[%s2583_s1 + $0x130] sm:$0xff]  ;;  %v65_v47 = vld [vmem:[%s2583_s1 + $0x140] sm:$0xff] }
  0x3b   :  { %1649 = vmatprep.mubr.msk.f32.mxu0 %vm89_vm0, %v49_v15  ;;  %v64_v44 = vld [vmem:[%s2583_s1 + $0x138] sm:$0xff]  ;;  %v725_v45 = vld [vmem:[%s2584_s2 + $0x1d0] sm:$0xff]  ;;  %v66_v48 = vld [vmem:[%s2583_s1 + $0x148] sm:$0xff] }
  0x3c   :  { %v709_v46 = vld [vmem:[%s2584_s2 + $0x150] sm:$0xff]  ;;  %v724_v49 = vld [vmem:[%s2584_s2 + $0x1c8] sm:$0xff]  ;;  %v723_v51 = vld [vmem:[%s2584_s2 + $0x1c0] sm:$0xff] }
  0x3d   :  { %1650 = vmatmul.mubr.msk.f32.gmra.mxu0 %vm89_vm0, %v50_v16  ;;  %v708_v50 = vld [vmem:[%s2584_s2 + $0x148] sm:$0xff]  ;;  %v707_v52 = vld [vmem:[%s2584_s2 + $0x140] sm:$0xff]  ;;  %v722_v53 = vld [vmem:[%s2584_s2 + $0x1b8] sm:$0xff] }
  0x3e   :  { %818 = vperm.xlu0 %1720, %v684_v17   ;;  %738 = vperm.xlu1 %1721, %v668_v18   ;;  %v706_v54 = vld [vmem:[%s2584_s2 + $0x138] sm:$0xff]  ;;  %v721_v55 = vld [vmem:[%s2584_s2 + $0x1b0] sm:$0xff]  ;;  %v720_v57 = vld [vmem:[%s2584_s2 + $0x1a8] sm:$0xff] }
  0x3f   :  { %1652 = vmatprep.mubr.msk.f32.mxu0 %vm89_vm0, %v51_v19  ;;  %v705_v56 = vld [vmem:[%s2584_s2 + $0x130] sm:$0xff]  ;;  %v704_v58 = vld [vmem:[%s2584_s2 + $0x128] sm:$0xff]  ;;  %v719_v59 = vld [vmem:[%s2584_s2 + $0x1a0] sm:$0xff] }
  0x40   :  { %v703_v60 = vld [vmem:[%s2584_s2 + $0x120] sm:$0xff]  ;;  %v718_v61 = vld [vmem:[%s2584_s2 + $0x198] sm:$0xff]  ;;  %v717_v63 = vld [vmem:[%s2584_s2 + $0x190] sm:$0xff] }
  0x41   :  { %1653 = vmatmul.mubr.msk.f32.gmra.mxu0 %vm89_vm0, %v52_v20  ;;  %v702_v62 = vld [vmem:[%s2584_s2 + $0x118] sm:$0xff]  ;;  %v701_v0 = vld [vmem:[%s2584_s2 + $0x110] sm:$0xff]  ;;  %v716_v1 = vld [vmem:[%s2584_s2 + $0x188] sm:$0xff] }
  0x42   :  { %813 = vperm.xlu0 %1720, %v683_v21   ;;  %733 = vperm.xlu1 %1721, %v667_v22   ;;  %v700_v2 = vld [vmem:[%s2584_s2 + $0x108] sm:$0xff]  ;;  %v715_v3 = vld [vmem:[%s2584_s2 + $0x180] sm:$0xff] }
  0x43   :  { %1655 = vmatprep.mubr.msk.f32.mxu0 %vm89_vm0, %v53_v23  ;;  %v699_v4 = vld [vmem:[%s2584_s2 + $0x100] sm:$0xff]  ;;  %v1340_v6 = vld [vmem:[%s2586_s4 + $0x8] sm:$0xff] }
  0x44   :  { %v1339_v5 = vld [vmem:[%s2586_s4] sm:$0xff]  ;;  %v1116_v20 = vld [vmem:[%s2585_s3 + $0x8] sm:$0xff] }
  0x45   :  { %1656 = vmatmul.mubr.msk.f32.gmra.mxu0 %vm89_vm0, %v54_v24  ;;  %1251 = vmatprep.mubr.f32.mxu1 %v1116_v20 }
  0x46   :  { %1048 = vperm.xlu0 %1720, %v730_v25   ;;  %968 = vperm.xlu1 %1721, %v714_v26  }
  0x47   :  { %1658 = vmatprep.mubr.msk.f32.mxu0 %vm89_vm0, %v55_v27 }
  0x49   :  { %1659 = vmatmul.mubr.msk.f32.gmra.mxu0 %vm89_vm0, %v56_v28 }
  0x4a   :  { %1043 = vperm.xlu0 %1720, %v729_v29   ;;  %963 = vperm.xlu1 %1721, %v713_v30  }
  0x4b   :  { %1661 = vmatprep.mubr.msk.f32.mxu0 %vm89_vm0, %v57_v31 }
  0x4d   :  { %1662 = vmatmul.mubr.msk.f32.gmra.mxu0 %vm89_vm0, %v58_v32 }
  0x4e   :  { %1038 = vperm.xlu0 %1720, %v728_v33   ;;  %958 = vperm.xlu1 %1721, %v712_v34  }
  0x4f   :  { %1664 = vmatprep.mubr.msk.f32.mxu0 %vm89_vm0, %v59_v35 }
  0x51   :  { %1665 = vmatmul.mubr.msk.f32.gmra.mxu0 %vm89_vm0, %v60_v36 }
  0x52   :  { %1033 = vperm.xlu0 %1720, %v727_v37   ;;  %953 = vperm.xlu1 %1721, %v711_v38  }
  0x53   :  { %1667 = vmatprep.mubr.msk.f32.mxu0 %vm89_vm0, %v61_v39 }
  0x55   :  { %1668 = vmatmul.mubr.msk.f32.gmra.mxu0 %vm89_vm0, %v62_v40 }
  0x56   :  { %1028 = vperm.xlu0 %1720, %v726_v41   ;;  %948 = vperm.xlu1 %1721, %v710_v42  }
  0x57   :  { %1670 = vmatprep.mubr.msk.f32.mxu0 %vm89_vm0, %v63_v43 }
  0x59   :  { %1671 = vmatmul.mubr.msk.f32.gmra.mxu0 %vm89_vm0, %v64_v44 }
  0x5a   :  { %1023 = vperm.xlu0 %1720, %v725_v45   ;;  %943 = vperm.xlu1 %1721, %v709_v46  }
  0x5b   :  { %1673 = vmatprep.mubr.msk.f32.mxu0 %vm89_vm0, %v65_v47 }
  0x5d   :  { %1674 = vmatmul.mubr.msk.f32.gmra.mxu0 %vm89_vm0, %v66_v48 }
  0x5e   :  { %1018 = vperm.xlu0 %1720, %v724_v49   ;;  %938 = vperm.xlu1 %1721, %v708_v50  }
  0x62   :  { %1013 = vperm.xlu0 %1720, %v723_v51   ;;  %933 = vperm.xlu1 %1721, %v707_v52  }
  0x66   :  { %1008 = vperm.xlu0 %1720, %v722_v53   ;;  %928 = vperm.xlu1 %1721, %v706_v54  }
  0x6a   :  { %1003 = vperm.xlu0 %1720, %v721_v55   ;;  %923 = vperm.xlu1 %1721, %v705_v56  }
  0x6e   :  { %998 = vperm.xlu0 %1720, %v720_v57   ;;  %918 = vperm.xlu1 %1721, %v704_v58  }
  0x72   :  { %993 = vperm.xlu0 %1720, %v719_v59   ;;  %913 = vperm.xlu1 %1721, %v703_v60  }
  0x76   :  { %988 = vperm.xlu0 %1720, %v718_v61   ;;  %908 = vperm.xlu1 %1721, %v702_v62  }
  0x7a   :  { %983 = vperm.xlu0 %1720, %v717_v63   ;;  %903 = vperm.xlu1 %1721, %v701_v0  }
  0x7e   :  { %978 = vperm.xlu0 %1720, %v716_v1   ;;  %898 = vperm.xlu1 %1721, %v700_v2   ;;  %v2249_v7 = vpop.permute.xlu0 %888  ;;  %v2251_v8 = vpop.permute.xlu1 %883 }
  0x82   :  { %973 = vperm.xlu0 %1720, %v715_v3   ;;  %893 = vperm.xlu1 %1721, %v699_v4  }
  0x83   :  { %v2253_v9 = vpop.permute.xlu0 %808  ;;  %v2255_v10 = vpop.permute.xlu1 %803 }
  0x86   :  { %1343 = vperm.xlu0 %1720, %v1339_v5   ;;  %1348 = vperm.xlu1 %1721, %v1340_v6  }
  0x89   :  { %v2257_v11 = vpop.permute.xlu0 %878  ;;  %v2259_v12 = vpop.permute.xlu1 %798 }
  0x8d   :  { %v2261_v13 = vpop.permute.xlu0 %873  ;;  %v2263_v14 = vpop.permute.xlu1 %793 }
  0x91   :  { %v2265_v15 = vpop.permute.xlu0 %868  ;;  %v2267_v16 = vpop.permute.xlu1 %788 }
  0x95   :  { %v2269_v17 = vpop.permute.xlu0 %863  ;;  %v2271_v18 = vpop.permute.xlu1 %783 }
  0x99   :  { %v2273_v19 = vpop.permute.xlu0 %858  ;;  %v2278_v21 = vpop.permute.xlu1 %778 }
  0x9d   :  { %v2280_v22 = vpop.permute.xlu0 %853  ;;  %v2282_v23 = vpop.permute.xlu1 %773 }
  0xa1   :  { %v2284_v24 = vpop.permute.xlu0 %848  ;;  %v2286_v25 = vpop.permute.xlu1 %768 }
  0xa5   :  { %v2288_v26 = vpop.permute.xlu0 %843  ;;  %v2290_v27 = vpop.permute.xlu1 %763 }
  0xa9   :  { %v2292_v28 = vpop.permute.xlu0 %838  ;;  %v2294_v29 = vpop.permute.xlu1 %758 }
  0xad   :  { %v2296_v30 = vpop.permute.xlu0 %833  ;;  %v2300_v32 = vpop.permute.xlu1 %753 }
  0xb1   :  { %v2304_v34 = vpop.permute.xlu0 %828  ;;  %v2312_v38 = vpop.permute.xlu1 %748 }
  0xb5   :  { %v2316_v40 = vpop.permute.xlu0 %823  ;;  %v2324_v44 = vpop.permute.xlu1 %743 }
  0xb6   :  { %2593 = vst [vmem:[#allocation10_spill] sm:$0xff] %v2324_v44 }
  0xb9   :  { %v2330_v47 = vpop.permute.xlu0 %818  ;;  %v2338_v51 = vpop.permute.xlu1 %738 }
  0xba   :  { %2595 = vst [vmem:[#allocation12_spill] sm:$0xff] %v2330_v47  ;;  %2597 = vst [vmem:[#allocation14_spill] sm:$0xff] %v2338_v51 }
  0xbd   :  { %v2342_v53 = vpop.permute.xlu0 %813  ;;  %v2348_v57 = vpop.permute.xlu1 %733 }
  0xbe   :  { %2598 = vst [vmem:[#allocation15_spill] sm:$0xff] %v2342_v53  ;;  %2600 = vst [vmem:[#allocation17_spill] sm:$0xff] %v2348_v57 }
  0xc1   :  { %v2352_v60 = vpop.permute.xlu0 %1048  ;;  %v2356_v0 = vpop.permute.xlu1 %968 }
  0xc2   :  { %2602 = vst [vmem:[#allocation19_spill] sm:$0xff] %v2352_v60  ;;  %2604 = vst [vmem:[#allocation21_spill] sm:$0xff] %v2356_v0 }
  0xc5   :  { %v2360_v2 = vpop.permute.xlu0 %1043  ;;  %v2368_v6 = vpop.permute.xlu1 %963 }
  0xc6   :  { %2606 = vst [vmem:[#allocation23_spill] sm:$0xff] %v2360_v2  ;;  %2609 = vst [vmem:[#allocation26_spill] sm:$0xff] %v2368_v6 }
  0xcd   :  { %v2298_v31 = vpop.f32.mrf.mxu0  ;;  %v2308_v36 = vpop.f32.mrf.mxu1 }
  0xce   :  { %2588 = vst [vmem:[#allocation5_spill] sm:$0xff] %v2298_v31  ;;  %2590 = vst [vmem:[#allocation7_spill] sm:$0xff] %v2308_v36 }
  0xcf   :  { %v2302_v33 = vpop.f32.mrf.mxu0  ;;  %v2318_v41 = vpop.f32.mrf.mxu1 }
  0xd0   :  { %2589 = vst [vmem:[#allocation6_spill] sm:$0xff] %v2302_v33  ;;  %2592 = vst [vmem:[#allocation9_spill] sm:$0xff] %v2318_v41 }
  0xd1   :  { %v2306_v35 = vpop.f32.mrf.mxu0  ;;  %v2326_v45 = vpop.f32.mrf.mxu1 }
  0xd2   :  { %2594 = vst [vmem:[#allocation11_spill] sm:$0xff] %v2326_v45 }
  0xd3   :  { %v2310_v37 = vpop.f32.mrf.mxu0  ;;  %v2334_v49 = vpop.f32.mrf.mxu1 }
  0xd4   :  { %2591 = vst [vmem:[#allocation8_spill] sm:$0xff] %v2310_v37  ;;  %2596 = vst [vmem:[#allocation13_spill] sm:$0xff] %v2334_v49 }
  0xd5   :  { %v2314_v39 = vpop.f32.mrf.mxu0  ;;  %v2344_v54 = vpop.f32.mrf.mxu1 }
  0xd6   :  { %2599 = vst [vmem:[#allocation16_spill] sm:$0xff] %v2344_v54 }
  0xd7   :  { %v2320_v42 = vpop.f32.mrf.mxu0  ;;  %v2350_v58 = vpop.f32.mrf.mxu1 }
  0xd8   :  { %2601 = vst [vmem:[#allocation18_spill] sm:$0xff] %v2350_v58  ;;  %v2382_v58 = vpop.permute.xlu1 %958 }
  0xd9   :  { %v2322_v43 = vpop.f32.mrf.mxu0  ;;  %v2354_v62 = vpop.f32.mrf.mxu1  ;;  %2613 = vst [vmem:[#allocation30_spill] sm:$0xff] %v2382_v58 }
  0xda   :  { %2603 = vst [vmem:[#allocation20_spill] sm:$0xff] %v2354_v62  ;;  %v2374_v62 = vpop.permute.xlu0 %1038 }
  0xdb   :  { %v2328_v46 = vpop.f32.mrf.mxu0  ;;  %v2362_v3 = vpop.f32.mrf.mxu1  ;;  %2611 = vst [vmem:[#allocation28_spill] sm:$0xff] %v2374_v62 }
  0xdc   :  { %2607 = vst [vmem:[#allocation24_spill] sm:$0xff] %v2362_v3  ;;  %v2392_v0 = vpop.permute.xlu1 %953 }
  0xdd   :  { %v2332_v48 = vpop.f32.mrf.mxu0  ;;  %v2370_v20 = vpop.f32.mrf.mxu1  ;;  %2616 = vst [vmem:[#allocation33_spill] sm:$0xff] %v2392_v0 }
  0xde   :  { %2610 = vst [vmem:[#allocation27_spill] sm:$0xff] %v2370_v20  ;;  %v2386_v2 = vpop.permute.xlu0 %1033 }
  0xdf   :  { %v2336_v50 = vpop.f32.mrf.mxu0  ;;  %v2378_v49 = vpop.f32.mrf.mxu1  ;;  %2614 = vst [vmem:[#allocation31_spill] sm:$0xff] %v2386_v2 }
  0xe0   :  { %2612 = vst [vmem:[#allocation29_spill] sm:$0xff] %v2378_v49 }
  0xe1   :  { %v2340_v52 = vpop.f32.mrf.mxu0  ;;  %v2388_v54 = vpop.f32.mrf.mxu1 }
  0xe2   :  { %2615 = vst [vmem:[#allocation32_spill] sm:$0xff] %v2388_v54  ;;  %v2396_v33 = vpop.permute.xlu0 %1028 }
  0xe3   :  { %v2346_v55 = vpop.f32.mrf.mxu0  ;;  %v2394_v62 = vpop.f32.mrf.mxu1  ;;  %2618 = vst [vmem:[#allocation35_spill] sm:$0xff] %v2396_v33 }
  0xe4   :  { %2617 = vst [vmem:[#allocation34_spill] sm:$0xff] %v2394_v62 }
  0xe5   :  { %v1633_v56 = vpop.f32.mrf.mxu0  ;;  %v2398_v57 = vpop.f32.mrf.mxu1 }
  0xe6   :  { %2619 = vst [vmem:[#allocation36_spill] sm:$0xff] %v2398_v57  ;;  %v2402_v2 = vpop.permute.xlu0 %1023 }
  0xe7   :  { %v408_v59 = vpop.f32.mrf.mxu0  ;;  %2621 = vst [vmem:[#allocation38_spill] sm:$0xff] %v2402_v2  ;;  %v2404_v54 = vpop.f32.mrf.mxu1 }
  0xe8   :  { %2622 = vst [vmem:[#allocation39_spill] sm:$0xff] %v2404_v54  ;;  %v1064_v54 = vsub.f32 %v1633_v56, %v2259_v12  ;;  %v1062_v12 = vsub.f32 %v2340_v52, %v2267_v16  ;;  %v1060_v16 = vsub.f32 %v2332_v48, %v2278_v21  ;;  %v1058_v48 = vsub.f32 %v2322_v43, %v2286_v25 }
  0xe9   :  { %v1636_v61 = vpop.f32.mrf.mxu0  ;;  %v2410_v33 = vpop.f32.mrf.mxu1 }
  0xea   :  { %v1066_v51 = vsub.f32 %v1636_v61, %v2253_v9  ;;  %2624 = vst [vmem:[#allocation41_spill] sm:$0xff] %v2410_v33  ;;  %v2415_v44 = vpop.permute.xlu0 %1018 }
  0xeb   :  { %v418_v63 = vpop.f32.mrf.mxu0  ;;  %v2420_v33 = vpop.f32.mrf.mxu1 }
  0xec   :  { %v1065_v57 = vsub.f32 %v418_v63, %v2255_v10  ;;  %v1138_v9 = vmul.f32 %v1066_v51, %v1066_v51  ;;  %v1061_v51 = vsub.f32 %v2346_v55, %v2271_v18  ;;  %v1059_v55 = vsub.f32 %v2336_v50, %v2282_v23 }
  0xed   :  { %v2358_v1 = vpop.f32.mrf.mxu0  ;;  %v1057_v63 = vsub.f32 %v2328_v46, %v2290_v27 }
  0xee   :  { %2605 = vst [vmem:[#allocation22_spill] sm:$0xff] %v2358_v1 }
  0xef   :  { %v2364_v4 = vpop.f32.mrf.mxu0 }
  0xf0   :  { %2608 = vst [vmem:[#allocation25_spill] sm:$0xff] %v2364_v4  ;;  %v2400_v4 = vpop.permute.xlu1 %948 }
  0xf1   :  { %v2366_v5 = vpop.f32.mrf.mxu0  ;;  %2620 = vst [vmem:[#allocation37_spill] sm:$0xff] %v2400_v4 }
  0xf3   :  { %v2372_v41 = vpop.f32.mrf.mxu0 }
  0xf4   :  { %v2407_v1 = vpop.permute.xlu1 %943 }
  0xf5   :  { %v2376_v36 = vpop.f32.mrf.mxu0  ;;  %2623 = vst [vmem:[#allocation40_spill] sm:$0xff] %v2407_v1 }
  0xf6   :  { %v1072_v25 = vsub.f32 %v2376_v36, %v2292_v28  ;;  %v1070_v36 = vsub.f32 %v2366_v5, %v2304_v34 }
  0xf7   :  { %v2380_v45 = vpop.f32.mrf.mxu0 }
  0xf8   :  { %v2422_v10 = vpop.permute.xlu1 %938  ;;  %v1071_v27 = vsub.f32 %v2380_v45, %v2296_v30  ;;  %v1054_v30 = vsub.f32 %v2306_v35, %v2312_v38  ;;  %v2629_v38 = vld [vmem:[#allocation14_spill] sm:$0xff] }
  0xf9   :  { %v2384_v3 = vpop.f32.mrf.mxu0 }
  0xfb   :  { %v2390_v6 = vpop.f32.mrf.mxu0 }
  0xfc   :  { %v2441_v52 = vpop.permute.xlu1 %933  ;;  %v1073_v23 = vsub.f32 %v2390_v6, %v2288_v26  ;;  %v1056_v26 = vsub.f32 %v2314_v39, %v2294_v29  ;;  %v1055_v6 = vsub.f32 %v2320_v42, %v2300_v32  ;;  %v1069_v32 = vsub.f32 %v2372_v41, %v2316_v40  ;;  %v2631_v41 = vld [vmem:[#allocation15_spill] sm:$0xff] }
  0xfd   :  { %v1651_v20 = vpop.f32.mrf.mxu0  ;;  %v1143_v42 = vmul.f32 %v1071_v27, %v1071_v27 }
  0xfe   :  { %v1145_v46 = vmul.f32 %v1073_v23, %v1073_v23  ;;  %v1128_v39 = vmul.f32 %v1056_v26, %v1056_v26  ;;  %v1127_v34 = vmul.f32 %v1055_v6, %v1055_v6  ;;  %v2638_v26 = vld [vmem:[#allocation23_spill] sm:$0xff]  ;;  %v2640_v6 = vld [vmem:[#allocation18_spill] sm:$0xff] }
  0xff   :  { %v468_v60 = vpop.f32.mrf.mxu0 }
 0x101   :  { %v1654_v49 = vpop.f32.mrf.mxu0 }
 0x103   :  { %v478_v58 = vpop.f32.mrf.mxu0 }
 0x105   :  { %v1657_v53 = vpop.f32.mrf.mxu0 }
 0x106   :  { %v1080_v4 = vsub.f32 %v1657_v53, %v2257_v11  ;;  %v1078_v11 = vsub.f32 %v1654_v49, %v2265_v15  ;;  %v2434_v15 = vpop.f32.mrf.mxu1  ;;  %v1076_v49 = vsub.f32 %v1651_v20, %v2273_v19  ;;  %v1129_v20 = vmul.f32 %v1057_v63, %v1057_v63  ;;  %v2636_v63 = vld [vmem:[#allocation21_spill] sm:$0xff] }
 0x107   :  { %v488_v31 = vpop.f32.mrf.mxu0 }
 0x108   :  { %v1079_v61 = vsub.f32 %v488_v31, %v2261_v13  ;;  %v1136_v13 = vmul.f32 %v1064_v54, %v1064_v54  ;;  %v1077_v31 = vsub.f32 %v478_v58, %v2269_v17  ;;  %v1150_v56 = vmul.f32 %v1078_v11, %v1078_v11  ;;  %v2446_v19 = vpop.f32.mrf.mxu1 }
 0x109   :  { %v1660_v0 = vpop.f32.mrf.mxu0  ;;  %v1134_v17 = vmul.f32 %v1062_v12, %v1062_v12  ;;  %v1075_v54 = vsub.f32 %v468_v60, %v2280_v22  ;;  %v1133_v58 = vmul.f32 %v1061_v51, %v1061_v51  ;;  %v1132_v22 = vmul.f32 %v1060_v16, %v1060_v16  ;;  %v2628_v12 = vld [vmem:[#allocation22_spill] sm:$0xff] }
 0x10a   :  { %v1082_v62 = vsub.f32 %v1660_v0, %v2249_v7  ;;  %v1063_v7 = vsub.f32 %v408_v59, %v2263_v14  ;;  %v1137_v0 = vmul.f32 %v1065_v57, %v1065_v57  ;;  %v1151_v14 = vmul.f32 %v1079_v61, %v1079_v61 }
 0x10b   :  { %v498_v47 = vpop.f32.mrf.mxu0  ;;  %v1149_v18 = vmul.f32 %v1077_v31, %v1077_v31  ;;  %v1074_v59 = vsub.f32 %v2384_v3, %v2284_v24  ;;  %v1147_v50 = vmul.f32 %v1075_v54, %v1075_v54  ;;  %v1131_v24 = vmul.f32 %v1059_v55, %v1059_v55  ;;  %v2634_v54 = vld [vmem:[#allocation6_spill] sm:$0xff] }
 0x10c   :  { %v1154_v37 = vmul.f32 %v1082_v62, %v1082_v62  ;;  %v1081_v2 = vsub.f32 %v498_v47, %v2251_v8  ;;  %v1152_v8 = vmul.f32 %v1080_v4, %v1080_v4  ;;  %v1135_v53 = vmul.f32 %v1063_v7, %v1063_v7  ;;  %v2625_v7 = vld [vmem:[#allocation10_spill] sm:$0xff] }
 0x10d   :  { %v2425_v47 = vpop.f32.mrf.mxu0  ;;  %v1148_v62 = vmul.f32 %v1076_v49, %v1076_v49  ;;  %v1146_v43 = vmul.f32 %v1074_v59, %v1074_v59  ;;  %v1130_v4 = vmul.f32 %v1058_v48, %v1058_v48  ;;  %v1144_v61 = vmul.f32 %v1072_v25, %v1072_v25  ;;  %v2632_v49 = vld [vmem:[#allocation25_spill] sm:$0xff]  ;;  %v2635_v48 = vld [vmem:[#allocation19_spill] sm:$0xff] }
 0x10e   :  { %v1153_v1 = vmul.f32 %v1081_v2, %v1081_v2  ;;  %1529 = vmatprep.subr.mxu1 %v1154_v37  ;;  %v2430_v37 = vpop.permute.xlu0 %1013  ;;  %v2462_v2 = vpop.permute.xlu1 %928  ;;  %v1142_v31 = vmul.f32 %v1070_v36, %v1070_v36  ;;  %v1141_v16 = vmul.f32 %v1069_v32, %v1069_v32 }
 0x10f   :  { %1530 = vmatpush3.msra.mxu1 %v1138_v9  ;;  %v2437_v57 = vpop.f32.mrf.mxu0 }
 0x110   :  { %1531 = vmatprep.subr.mxu1 %v1153_v1  ;;  %v2460_v1 = vpop.f32.mrf.mxu1 }
 0x111   :  { %1532 = vmatpush3.msra.mxu1 %v1137_v0  ;;  %v2450_v21 = vpop.f32.mrf.mxu0  ;;  %v2626_v0 = vld [vmem:[#allocation8_spill] sm:$0xff] }
 0x112   :  { %1533 = vmatprep.subr.mxu1 %v1152_v8  ;;  %v2454_v60 = vpop.permute.xlu0 %1008  ;;  %v648_v28 = vpop.f32.mrf.mxu1  ;;  %v1053_v11 = vsub.f32 %v2626_v0, %v2625_v7  ;;  %v2627_v8 = vld [vmem:[#allocation12_spill] sm:$0xff]  ;;  %v1120_v7 = vld [vmem:[%s2585_s3 + $0x28] sm:$0xff] }
 0x113   :  { %1534 = vmatpush3.msra.mxu1 %v1136_v13  ;;  %v2466_v3 = vpop.f32.mrf.mxu0  ;;  %v2482_v45 = vpop.permute.xlu1 %923  ;;  %v1068_v13 = vsub.f32 %v2628_v12, %v2627_v8  ;;  %v2642_v0 = vld [vmem:[#allocation30_spill] sm:$0xff]  ;;  %v2644_v12 = vld [vmem:[#allocation31_spill] sm:$0xff] }
 0x114   :  { %1535 = vmatprep.subr.mxu1 %v1151_v14  ;;  %v1708_v5 = vpop.f32.mrf.mxu1  ;;  %v2630_v14 = vld [vmem:[#allocation5_spill] sm:$0xff]  ;;  %v1125_v55 = vmul.f32 %v1053_v11, %v1053_v11  ;;  %v2643_v11 = vld [vmem:[#allocation11_spill] sm:$0xff] }
 0x115   :  { %1536 = vmatpush3.msra.mxu1 %v1135_v53  ;;  %v2478_v29 = vpop.f32.mrf.mxu0  ;;  %v1052_v51 = vsub.f32 %v2630_v14, %v2629_v38  ;;  %v1126_v53 = vmul.f32 %v1054_v30, %v1054_v30  ;;  %v2641_v30 = vld [vmem:[#allocation28_spill] sm:$0xff]  ;;  %v2646_v38 = vld [vmem:[#allocation13_spill] sm:$0xff] }
 0x116   :  { %1537 = vmatprep.subr.mxu1 %v1150_v56  ;;  %v2474_v9 = vpop.permute.xlu0 %1003  ;;  %v1067_v56 = vsub.f32 %v2632_v49, %v2631_v41  ;;  %v2647_v41 = vld [vmem:[#allocation35_spill] sm:$0xff] }
 0x117   :  { %1538 = vmatpush3.msra.mxu1 %v1134_v17  ;;  %v2490_v35 = vpop.f32.mrf.mxu0  ;;  %v2633_v17 = vld [vmem:[#allocation17_spill] sm:$0xff]  ;;  %v2500_v59 = vpop.permute.xlu1 %918  ;;  %v1110_v49 = vsub.f32 %v2434_v15, %v2647_v41 }
 0x118   :  { %1539 = vmatprep.subr.mxu1 %v1149_v18  ;;  %v1051_v18 = vsub.f32 %v2634_v54, %v2633_v17  ;;  %v2648_v17 = vld [vmem:[#allocation37_spill] sm:$0xff]  ;;  %v2649_v54 = vld [vmem:[#allocation7_spill] sm:$0xff] }
 0x119   :  { %1540 = vmatpush3.msra.mxu1 %v1133_v58  ;;  %v658_v58 = vpop.f32.mrf.mxu1  ;;  %v2503_v23 = vpop.f32.mrf.mxu0 }
 0x11a   :  { %1541 = vmatprep.subr.mxu1 %v1148_v62  ;;  %v2494_v40 = vpop.permute.xlu0 %998  ;;  %v1140_v62 = vmul.f32 %v1068_v13, %v1068_v13  ;;  %v1123_v27 = vmul.f32 %v1051_v18, %v1051_v18  ;;  %v1111_v13 = vsub.f32 %v648_v28, %v2644_v12  ;;  %v1118_v28 = vld [vmem:[%s2585_s3 + $0x18] sm:$0xff]  ;;  %v1094_v18 = vsub.f32 %v2649_v54, %v2648_v17 }
 0x11b   :  { %1542 = vmatpush3.msra.mxu1 %v1132_v22  ;;  %v1114_v22 = vsub.f32 %v1708_v5, %v2635_v48  ;;  %v2522_v8 = vpop.permute.xlu1 %913 }
 0x11c   :  { %1543 = vmatprep.subr.mxu1 %v1147_v50  ;;  %v1124_v50 = vmul.f32 %v1052_v51, %v1052_v51 }
 0x11d   :  { %1544 = vmatpush3.msra.mxu1 %v1131_v24  ;;  %v2637_v24 = vld [vmem:[#allocation16_spill] sm:$0xff]  ;;  %v1186_v32 = vmul.f32 %v1114_v22, %v1114_v22  ;;  %v1183_v22 = vmul.f32 %v1111_v13, %v1111_v13 }
 0x11e   :  { %1545 = vmatprep.subr.mxu1 %v1146_v43  ;;  %v1098_v25 = vsub.f32 %v2637_v24, %v2636_v63  ;;  %v1139_v43 = vmul.f32 %v1067_v56, %v1067_v56  ;;  %v2510_v36 = vpop.permute.xlu0 %993  ;;  %v2652_v63 = vld [vmem:[#allocation9_spill] sm:$0xff] }
 0x11f   :  { %1546 = vmatpush3.msra.mxu1 %v1130_v4  ;;  %v1113_v4 = vsub.f32 %v658_v58, %v2638_v26  ;;  %v1182_v26 = vmul.f32 %v1110_v49, %v1110_v49  ;;  %v2659_v49 = vld [vmem:[#allocation29_spill] sm:$0xff] }
 0x120   :  { %1547 = vmatprep.subr.mxu1 %v1145_v46  ;;  %v2639_v46 = vld [vmem:[#allocation26_spill] sm:$0xff]  ;;  %v1170_v5 = vmul.f32 %v1098_v25, %v1098_v25  ;;  %v2653_v25 = vld [vmem:[#allocation41_spill] sm:$0xff] }
 0x121   :  { %1548 = vmatpush3.msra.mxu1 %v1129_v20  ;;  %v1097_v20 = vsub.f32 %v2640_v6, %v2639_v46  ;;  %v1166_v46 = vmul.f32 %v1094_v18, %v1094_v18 }
 0x122   :  { %1549 = vmatprep.subr.mxu1 %v1144_v61  ;;  %v1115_v61 = vld [vmem:[%s2585_s3] sm:$0xff]  ;;  %v989_v58 = vpop.permute.xlu0 %988 }
 0x123   :  { %1550 = vmatpush3.msra.mxu1 %v1128_v39  ;;  %v1112_v39 = vsub.f32 %v2460_v1, %v2641_v30  ;;  %v2645_v1 = vld [vmem:[#allocation33_spill] sm:$0xff]  ;;  %v1169_v51 = vmul.f32 %v1097_v20, %v1097_v20 }
 0x124   :  { %1551 = vmatprep.subr.mxu1 %v1143_v42  ;;  %v538_v42 = vpop.f32.mrf.mxu0  ;;  %v1095_v14 = vsub.f32 %v2646_v38, %v2645_v1 }
 0x125   :  { %1552 = vmatpush3.msra.mxu1 %v1127_v34  ;;  %v1096_v34 = vsub.f32 %v2643_v11, %v2642_v0  ;;  %v1184_v56 = vmul.f32 %v1112_v39, %v1112_v39  ;;  %v1090_v0 = vsub.f32 %v2503_v23, %v2462_v2  ;;  %v2655_v11 = vld [vmem:[#allocation39_spill] sm:$0xff]  ;;  %v1088_v2 = vsub.f32 %v2478_v29, %v2500_v59 }
 0x126   :  { %1553 = vmatprep.subr.mxu1 %v1142_v31  ;;  %v1185_v31 = vmul.f32 %v1113_v4, %v1113_v4  ;;  %v1167_v15 = vmul.f32 %v1095_v14, %v1095_v14  ;;  %v909_v4 = vpop.permute.xlu1 %908  ;;  %v984_v30 = vpop.permute.xlu0 %983 }
 0x127   :  { %1554 = vmatpush3.msra.mxu1 %v1126_v53  ;;  %v1119_v53 = vld [vmem:[%s2585_s3 + $0x20] sm:$0xff]  ;;  %v1162_v23 = vmul.f32 %v1090_v0, %v1090_v0  ;;  %v1086_v41 = vsub.f32 %v2450_v21, %v909_v4  ;;  %v1160_v29 = vmul.f32 %v1088_v2, %v1088_v2 }
 0x128   :  { %1555 = vmatprep.subr.mxu1 %v1141_v16  ;;  %v1675_v16 = vpop.f32.mrf.mxu0 }
 0x129   :  { %1556 = vmatpush3.msra.mxu1 %v1125_v55  ;;  %v1168_v55 = vmul.f32 %v1096_v34, %v1096_v34  ;;  %v1092_v6 = vsub.f32 %v1675_v16, %v2422_v10  ;;  %v1158_v18 = vmul.f32 %v1086_v41, %v1086_v41 }
 0x12a   :  { %1557 = vmatprep.subr.mxu1 %v1140_v62  ;;  %v2650_v62 = vld [vmem:[#allocation38_spill] sm:$0xff]  ;;  %v904_v34 = vpop.permute.xlu1 %903 }
 0x12b   :  { %1558 = vmatpush3.msra.mxu1 %v1124_v50  ;;  %v1109_v48 = vsub.f32 %v2446_v19, %v2650_v62  ;;  %v2651_v50 = vld [vmem:[#allocation40_spill] sm:$0xff]  ;;  %v1107_v19 = vsub.f32 %v2420_v33, %v2430_v37  ;;  %v1164_v10 = vmul.f32 %v1092_v6, %v1092_v6  ;;  %v1105_v33 = vsub.f32 %v2655_v11, %v2474_v9  ;;  %v2657_v9 = vld [vmem:[#allocation34_spill] sm:$0xff] }
 0x12c   :  { %1559 = vmatprep.subr.mxu1 %v1139_v43  ;;  %v1093_v24 = vsub.f32 %v2652_v63, %v2651_v50  ;;  %v1108_v43 = vsub.f32 %v2653_v25, %v2415_v44  ;;  %v2654_v44 = vld [vmem:[#allocation36_spill] sm:$0xff]  ;;  %v1103_v38 = vsub.f32 %v2657_v9, %v2510_v36  ;;  %v1085_v16 = vsub.f32 %v2466_v3, %v904_v34 }
 0x12d   :  { %1560 = vmatpush3.msra.mxu1 %v1123_v27  ;;  %v548_v27 = vpop.f32.mrf.mxu0  ;;  %v1181_v20 = vmul.f32 %v1109_v48, %v1109_v48  ;;  %v1179_v37 = vmul.f32 %v1107_v19, %v1107_v19  ;;  %v1177_v1 = vmul.f32 %v1105_v33, %v1105_v33 }
 0x12e   :  { %1567 = vmatprep.subr.mxu1 %v1186_v32  ;;  %1252 = vmatmul.mubr.f32.vlgmr.msra.gmra.mxu1 %v1115_v61  ;;  %v1165_v61 = vmul.f32 %v1093_v24, %v1093_v24  ;;  %v1091_v39 = vsub.f32 %v548_v27, %v2441_v52  ;;  %v1106_v32 = vsub.f32 %v2654_v44, %v2454_v60  ;;  %v2656_v60 = vld [vmem:[#allocation32_spill] sm:$0xff] }
 0x12f   :  { %1568 = vmatpush3.msra.mxu1 %v1170_v5  ;;  %1256 = vmatprep.mubr.f32.mxu1 %v1120_v7  ;;  %v1180_v7 = vmul.f32 %v1108_v43, %v1108_v43  ;;  %v1089_v5 = vsub.f32 %v538_v42, %v2482_v45  ;;  %v1104_v13 = vsub.f32 %v2656_v60, %v2494_v40  ;;  %v1122_v24 = vld [vmem:[%s2585_s3 + $0x38] sm:$0xff] }
 0x130   :  { %1569 = vmatprep.subr.mxu1 %v1185_v31  ;;  %v1163_v52 = vmul.f32 %v1091_v39, %v1091_v39  ;;  %v1178_v12 = vmul.f32 %v1106_v32, %v1106_v32  ;;  %v979_v31 = vpop.permute.xlu0 %978  ;;  %v1087_v45 = vsub.f32 %v2490_v35, %v2522_v8  ;;  %v1175_v59 = vmul.f32 %v1103_v38, %v1103_v38  ;;  %v2660_v8 = vld [vmem:[#allocation20_spill] sm:$0xff] }
 0x131   :  { %1570 = vmatpush3.msra.mxu1 %v1169_v51  ;;  %v1161_v42 = vmul.f32 %v1089_v5, %v1089_v5  ;;  %v1176_v14 = vmul.f32 %v1104_v13, %v1104_v13  ;;  %v2658_v51 = vld [vmem:[#allocation27_spill] sm:$0xff]  ;;  %v1100_v17 = vsub.f32 %v2660_v8, %v979_v31 }
 0x132   :  { %1571 = vmatprep.subr.mxu1 %v1184_v56  ;;  %1257 = vmatmul.mubr.f32.gmra.mxu1 %v1119_v53  ;;  %v1102_v40 = vsub.f32 %v2658_v51, %v989_v58  ;;  %v899_v53 = vpop.permute.xlu1 %898  ;;  %v1101_v56 = vsub.f32 %v2659_v49, %v984_v30 }
 0x133   :  { %1572 = vmatpush3.msra.mxu1 %v1168_v55  ;;  %1326 = vmatprep.mubr.f32.mxu1 %v1118_v28  ;;  %v1159_v28 = vmul.f32 %v1087_v45, %v1087_v45  ;;  %v1084_v54 = vsub.f32 %v2425_v47, %v899_v53  ;;  %v2661_v55 = vld [vmem:[#allocation24_spill] sm:$0xff]  ;;  %v1172_v3 = vmul.f32 %v1100_v17, %v1100_v17  ;;  %v1117_v47 = vld [vmem:[%s2585_s3 + $0x10] sm:$0xff] }
 0x134   :  { %1573 = vmatprep.subr.mxu1 %v1183_v22  ;;  %v974_v36 = vpop.permute.xlu0 %973  ;;  %v1174_v35 = vmul.f32 %v1102_v40, %v1102_v40  ;;  %v1173_v21 = vmul.f32 %v1101_v56, %v1101_v56  ;;  %v1157_v22 = vmul.f32 %v1085_v16, %v1085_v16 }
 0x135   :  { %1574 = vmatpush3.msra.mxu1 %v1167_v15  ;;  %v1099_v58 = vsub.f32 %v2661_v55, %v974_v36  ;;  %v1156_v15 = vmul.f32 %v1084_v54, %v1084_v54 }
 0x136   :  { %1575 = vmatprep.subr.mxu1 %v1182_v26  ;;  %v894_v62 = vpop.permute.xlu1 %893 }
 0x137   :  { %1576 = vmatpush3.msra.mxu1 %v1166_v46  ;;  %v1083_v48 = vsub.f32 %v2437_v57, %v894_v62  ;;  %v1171_v50 = vmul.f32 %v1099_v58, %v1099_v58  ;;  %v1121_v57 = vld [vmem:[%s2585_s3 + $0x30] sm:$0xff]  ;;  %s1752_s3 = smov [#allocation2]  }
 0x138   :  { %1577 = vmatprep.subr.mxu1 %v1181_v20  ;;  %s1389_s13 = sshll.u32 %s1752_s3, 4  ;;  %s1390_s13 = int_to_ptr.vmem [resolvable:$true] %s1389_s13 }
 0x139   :  { %1578 = vmatpush3.msra.mxu1 %v1165_v61  ;;  %v1155_v63 = vmul.f32 %v1083_v48, %v1083_v48  ;;  %s1728_s14 = scalar_lea.vmem %s1390_s13, 16  ;;  %s1732_s0 = scalar_lea.vmem %s1390_s13, 32 }
 0x13a   :  { %1579 = vmatprep.subr.mxu1 %v1180_v7  ;;  %v1349_v11 = vpop.permute.xlu1 %1348  ;;  %p1729_p0 = scmp.ne.s32.totalorder %s1390_s13, %s1728_s14  ;;  %p1733_p1 = scmp.lt.s32.totalorder %s1390_s13, %s1390_s13 }
 0x13b   :  { %1580 = vmatpush3.msra.mxu1 %v1164_v10  ;;  %v1344_v10 = vpop.permute.xlu0 %1343  ;;  %p1734_p2 = scmp.lt.s32.totalorder %s1732_s0, %s1728_s14 }
 0x13c   :  { %1581 = vmatprep.subr.mxu1 %v1179_v37 }
 0x13d   :  { %1582 = vmatpush3.msra.mxu1 %v1163_v52  ;;  %p1735_p3 = por %p1734_p2, %p1733_p1 }
 0x13e   :  { %1583 = vmatprep.subr.mxu1 %v1178_v12 }
 0x13f   :  { %1584 = vmatpush3.msra.mxu1 %v1162_v23  ;;  %p1736_p4 = pnand %p1735_p3, %p1729_p0 }
 0x140   :  { %1585 = vmatprep.subr.mxu1 %v1177_v1 }
 0x141   :  { %1586 = vmatpush3.msra.mxu1 %v1161_v42 }
 0x142   :  { %1587 = vmatprep.subr.mxu1 %v1176_v14 }
 0x143   :  { %1588 = vmatpush3.msra.mxu1 %v1160_v29 }
 0x144   :  { %1589 = vmatprep.subr.mxu1 %v1175_v59 }
 0x145   :  { %1590 = vmatpush3.msra.mxu1 %v1159_v28 }
 0x146   :  { %1591 = vmatprep.subr.mxu1 %v1174_v35 }
 0x147   :  { %1592 = vmatpush3.msra.mxu1 %v1158_v18 }
 0x148   :  { %1593 = vmatprep.subr.mxu1 %v1173_v21 }
 0x149   :  { %1594 = vmatpush3.msra.mxu1 %v1157_v22 }
 0x14a   :  { %1595 = vmatprep.subr.mxu1 %v1172_v3 }
 0x14b   :  { %1596 = vmatpush3.msra.mxu1 %v1156_v15 }
 0x14c   :  { %1597 = vmatprep.subr.mxu1 %v1171_v50 }
 0x14d   :  { %1598 = vmatpush3.msra.mxu1 %v1155_v63 }
 0x14e   :  { %1327 = vmatmul.mubr.f32.vlgmr.msra.gmra.mxu1 %v1117_v47 }
 0x14f   :  { %1331 = vmatprep.mubr.f32.mxu1 %v1122_v24 }
 0x152   :  { %1332 = vmatmul.mubr.f32.gmra.mxu1 %v1121_v57 }
 0x1ee   :  { %v1561_v25 = vpop.f32.mrf.mxu1 }
 0x1f0   :  { %v1562_v43 = vpop.f32.mrf.mxu1 }
 0x1f1   :  { %v1563_v6 = vadd.f32 %v1562_v43, %v1561_v25 }
 0x1f2   :  { %v1564_v26 = vpop.f32.mrf.mxu1 }
 0x1f4   :  { %v1565_v4 = vpop.f32.mrf.mxu1 }
 0x1f5   :  { %v1566_v39 = vadd.f32 %v1565_v4, %v1564_v26 }
 0x20e   :  { %v1599_v27 = vpop.f32.mrf.mxu1 }
 0x210   :  { %v1600_v46 = vpop.f32.mrf.mxu1 }
 0x211   :  { %v1601_v19 = vadd.f32 %v1600_v46, %v1599_v27 }
 0x212   :  { %v1602_v20 = vpop.f32.mrf.mxu1 }
 0x213   :  { %v1329_v61 = vadd.f32 %v1601_v19, %v1563_v6 }
 0x214   :  { %v1603_v30 = vpop.f32.mrf.mxu1 }
 0x215   :  { %v1604_v44 = vadd.f32 %v1603_v30, %v1602_v20  ;;  %v1337_v32 = vmul.f32 -0.5, %v1329_v61 }
 0x217   :  { %v1334_v7 = vadd.f32 %v1604_v44, %v1566_v39  ;;  %v1351_v33 = vadd.f32 %v1344_v10, %v1337_v32 }
 0x219   :  { %v1338_v0 = vmul.f32 -0.5, %v1334_v7 }
 0x21b   :  { %v1352_v37 = vadd.f32 %v1349_v11, %v1338_v0 }
 0x21d   :  { %v1353_v34 = vmax.f32 %v1351_v33, %v1352_v37 }
 0x21f   :  { %v1354_v5 = vrot.slane %v1353_v34, 4 }
 0x221   :  { %v1355_v52 = vmax.f32 %v1353_v34, %v1354_v5 }
 0x223   :  { %v1356_v12 = vrot.slane %v1355_v52, 2 }
 0x225   :  { %v1357_v60 = vmax.f32 %v1355_v52, %v1356_v12 }
 0x227   :  { %v1358_v13 = vrot.slane %v1357_v60, 1 }
 0x229   :  { %v1359_v31 = vmax.f32 %v1357_v60, %v1358_v13 }
 0x22b   :  { %vm1360_vm1 = vweird.f32 %v1359_v31 }
 0x22c   :  { %vm1361_vm3 = vmxor %vm1360_vm1, %vm1751_vm2 }
 0x22d   :  { %v1362_v2 = vsel %vm1361_vm3, %v1359_v31, 0.0 }
 0x22e   :  { %v1363_v23 = vsub.f32 %v1351_v33, %v1362_v2  ;;  %v1364_v1 = vsub.f32 %v1352_v37, %v1362_v2 }
 0x230   :  { %v1365_v9 = vmul.f32 1.442695, %v1363_v23  ;;  %v1367_v38 = vmul.f32 1.442695, %v1364_v1 }
 0x232   :  { %1722 = vpow2.f32 %v1365_v9 }
 0x233   :  { %1724 = vpow2.f32 %v1367_v38 }
 0x23f   :  { %v1723_v45 = vpop.eup %1722 }
 0x240   :  { %v1725_v42 = vpop.eup %1724 }
 0x241   :  { %v1369_v14 = vadd.f32 %v1725_v42, %v1723_v45 }
 0x243   :  { %v1370_v51 = vrot.slane %v1369_v14, 4 }
 0x245   :  { %v1371_v40 = vadd.f32 %v1370_v51, %v1369_v14 }
 0x247   :  { %v1372_v53 = vrot.slane %v1371_v40, 2 }
 0x249   :  { %v1373_v41 = vadd.f32 %v1372_v53, %v1371_v40 }
 0x24b   :  { %v1374_v29 = vrot.slane %v1373_v41, 1 }
 0x24d   :  { %v1375_v59 = vadd.f32 %v1374_v29, %v1373_v41 }
 0x24f   :  { %1726 = vlog2.f32 %v1375_v59 }
 0x25c   :  { %v1727_v49 = vpop.eup %1726 }
 0x25d   :  { %v1377_v56 = vmul.f32 0.6931472, %v1727_v49 }
 0x25f   :  { %v1378_v36 = vadd.f32 %v1377_v56, %v1362_v2 }
 0x261   :  { %vm1379_vm4 = vcmp.eq.f32.partialorder %v1378_v36, -inf }
 0x262   :  { %v1380_v16 = vsel %vm1379_vm4, -100000.0, %v1378_v36 }
 0x263   :  { %v1381_v28 = vadd.f32 -29.406033, %v1380_v16 }
 0x265   :  { %1382 = vst [vmem:[#allocation2] sm:$0x1] %v1381_v28 }
 0x266   :  { %1739 = shalt.err (!%p1736_p4)
}
 0x267   :  { %1392 = dma.vmem_to_hbm [thread:$0]  %s1390_s13, 16, %s2587_s5, [#allocation3]  }
 0x268   :  { %1748 = dma.done.wait [#allocation3], 16  }
 0x269   :  { %1749 = vsyncadd [#allocation3], 4294967280 }
 0x26a   :  { %1396 = vsyncpa [#allocation3], 1 }

</bundles_post_ra>
